<compile_context>
chip_gen: v7x
topology: tpu7x:2x2x1
jax: 0.10.0
libtpu: 0.0.40
codegen_flags: <defaults>
</compile_context>

<pallas_src>
import functools

import jax
import jax.numpy as jnp
from jax import lax
from jax.experimental import pallas as pl
from jax.experimental.pallas import tpu as pltpu


def _attention_classifier_kernel(
    x_ref,      # (TB*S, F)   bf16
    wqkv_ref,   # (F, 3F)     bf16   (query columns pre-scaled by 1/sqrt(F))
    bqkv_ref,   # (1, 3F)     f32
    wc_ref,     # (F, LP)     bf16   (lane-padded classifier weight)
    bc_ref,     # (1, LP)     f32
    out_ref,    # (TB*S, LP)  f32
    *,
    seq_len: int,
    batch_block: int,
    feature_size: int,
):
    f = feature_size
    s = seq_len

    x = x_ref[...]                                            # bf16 (TB*S, F)

    # Fused Q|K|V projection: one wide MXU matmul, f32 accumulation.
    qkv = jnp.dot(x, wqkv_ref[...], preferred_element_type=jnp.float32)
    qkv = qkv + bqkv_ref[...]                                 # (TB*S, 3F) f32

    # Per-batch-element attention. batch_block is small & static -> unrolled,
    # which keeps every matmul a plain 2-D MXU op.
    for b in range(batch_block):
        lo, hi = b * s, (b + 1) * s
        q = qkv[lo:hi, 0 * f:1 * f].astype(jnp.bfloat16)      # scale already folded in
        k = qkv[lo:hi, 1 * f:2 * f].astype(jnp.bfloat16)
        v = qkv[lo:hi, 2 * f:3 * f].astype(jnp.bfloat16)

        # scores = Q K^T : contract feature axes directly (no K transpose).
        scores = lax.dot_general(
            q, k,
            dimension_numbers=(((1,), (1,)), ((), ())),
            preferred_element_type=jnp.float32,
        )                                                     # (S, S) f32

        # TODO(synk): optional attention mask (masked_fill(mask == 0, -1e9))
        # is not wired in; the reference forward here is exercised with
        # mask=None.

        # Numerically stable softmax, kept in f32; reciprocal on the EUP.
        m = jnp.max(scores, axis=-1, keepdims=True)
        e = jnp.exp(scores - m)
        attn = e * pl.reciprocal(jnp.sum(e, axis=-1, keepdims=True), approx=True)

        # output = attn @ V, then classifier head (lane-padded to LP columns).
        ctx = jnp.dot(attn.astype(jnp.bfloat16), v,
                      preferred_element_type=jnp.float32)      # (S, F) f32
        logits = jnp.dot(ctx.astype(jnp.bfloat16), wc_ref[...],
                         preferred_element_type=jnp.float32) + bc_ref[...]

        out_ref[lo:hi, :] = logits.astype(out_ref.dtype)


def attention_classifier_forward(x, params, *, batch_block=None):
    """x: (B, S, F) float32. params: dict of weights in PyTorch (out, in) layout."""
    B, S, F = x.shape
    L = params["wc"].shape[0]
    LANE = 128
    LP = ((L + LANE - 1) // LANE) * LANE                      # lane-dense head width

    if batch_block is None:
        # Enough rows per grid step to amortize the ~0.35us/step overhead,
        # while keeping >= 2 grid steps when B allows (v7x megacore).
        cap = max(1, min(8, B // 2 if B >= 2 else B))
        batch_block = 1
        for tb in range(cap, 0, -1):
            if B % tb == 0:
                batch_block = tb
                break
    TB = batch_block
    assert B % TB == 0, "batch_block must divide batch size"
    rows_per_step = TB * S

    scale = 1.0 / float(F) ** 0.5

    # Fuse Q|K|V into one (F, 3F) operand (transpose PyTorch (out,in) weights),
    # folding the 1/sqrt(F) score scale into the query weight & bias.
    w_qkv = jnp.concatenate(
        [params["wq"].T * scale, params["wk"].T, params["wv"].T], axis=1
    ).astype(jnp.bfloat16)
    b_qkv = jnp.concatenate(
        [params["bq"] * scale, params["bk"], params["bv"]]
    ).reshape(1, 3 * F).astype(jnp.float32)

    # Lane-pad the classifier head to LP (>=128) columns -> unmasked stores.
    wc = jnp.zeros((F, LP), jnp.float32).at[:, :L].set(params["wc"].T)
    wc = wc.astype(jnp.bfloat16)
    bc = jnp.zeros((1, LP), jnp.float32).at[:, :L].set(params["bc"].reshape(1, L))

    # Flatten (B, S) -> rows; bf16 halves the x HBM->VMEM DMA bytes.
    x_rows = x.reshape(B * S, F).astype(jnp.bfloat16)

    kernel = functools.partial(
        _attention_classifier_kernel,
        seq_len=S, batch_block=TB, feature_size=F,
    )

    # Rough VMEM budget (double-buffered operands); raise the scoped limit only
    # when the 32 MiB default would not fit (large F on v7x / v6e).
    est_vmem = 2 * (
        rows_per_step * F * 2          # x block          (bf16)
        + F * 3 * F * 2                # fused QKV weight (bf16)
        + 3 * F * 4                    # fused QKV bias   (f32)
        + F * LP * 2                   # classifier weight(bf16)
        + LP * 4                       # classifier bias  (f32)
        + rows_per_step * LP * 4       # output block     (f32)
    )
    compiler_kwargs = dict(dimension_semantics=("parallel",))
    if est_vmem > 32 * 1024 * 1024:
        compiler_kwargs["vmem_limit_bytes"] = min(int(1.5 * est_vmem),
                                                  100 * 1024 * 1024)

    out = pl.pallas_call(
        kernel,
        out_shape=jax.ShapeDtypeStruct((B * S, LP), jnp.float32),
        grid_spec=pltpu.PrefetchScalarGridSpec(
            num_scalar_prefetch=0,
            grid=(B // TB,),
            in_specs=[
                pl.BlockSpec((rows_per_step, F), lambda i: (i, 0)),   # x rows
                pl.BlockSpec((F, 3 * F), lambda i: (0, 0)),           # fused Wqkv
                pl.BlockSpec((1, 3 * F), lambda i: (0, 0)),           # fused bqkv
                pl.BlockSpec((F, LP), lambda i: (0, 0)),              # Wc (padded)
                pl.BlockSpec((1, LP), lambda i: (0, 0)),              # bc (padded)
            ],
            out_specs=pl.BlockSpec((rows_per_step, LP), lambda i: (i, 0)),
        ),
        compiler_params=pltpu.CompilerParams(**compiler_kwargs),
    )(x_rows, w_qkv, b_qkv, wc, bc)

    return out.reshape(B, S, LP)[:, :, :L]


def _init_params(key, feature_size, num_labels):
    """Deterministic init, PyTorch nn.Linear-style uniform(-1/sqrt(in), 1/sqrt(in))."""
    keys = jax.random.split(key, 8)
    bound_f = 1.0 / jnp.sqrt(jnp.float32(feature_size))

    def u(k, shape, bound):
        return jax.random.uniform(k, shape, jnp.float32, -bound, bound)

    return {
        # PyTorch layout: (out_features, in_features)
        "wq": u(keys[0], (feature_size, feature_size), bound_f),
        "bq": u(keys[1], (feature_size,), bound_f),
        "wk": u(keys[2], (feature_size, feature_size), bound_f),
        "bk": u(keys[3], (feature_size,), bound_f),
        "wv": u(keys[4], (feature_size, feature_size), bound_f),
        "bv": u(keys[5], (feature_size,), bound_f),
        "wc": u(keys[6], (num_labels, feature_size), bound_f),
        "bc": u(keys[7], (num_labels,), bound_f),
    }


def _reference_forward(x, params):
    """Pure-JAX (f32) reference mirroring the PyTorch module."""
    q = x @ params["wq"].T + params["bq"]
    k = x @ params["wk"].T + params["bk"]
    v = x @ params["wv"].T + params["bv"]
    scores = jnp.matmul(q, jnp.swapaxes(k, -2, -1)) / jnp.sqrt(
        jnp.float32(x.shape[-1])
    )
    attn = jax.nn.softmax(scores, axis=-1)
    out = jnp.matmul(attn, v)
    logits = out @ params["wc"].T + params["bc"]
    return logits


if __name__ == "__main__":
    B, S, F, L = 4, 8, 32, 4

    key = jax.random.PRNGKey(0)
    k_x, k_p = jax.random.split(key)
    x = jax.random.normal(k_x, (B, S, F), dtype=jnp.float32)
    params = _init_params(k_p, feature_size=F, num_labels=L)

    logits = attention_classifier_forward(x, params)
    logits = jax.block_until_ready(logits)

    ref = _reference_forward(x, params)
    assert logits.shape == (B, S, L)
    # bf16 MXU inputs vs a pure-f32 reference -> relaxed tolerance.
    max_err = float(jnp.max(jnp.abs(logits - ref)))
    assert jnp.allclose(logits, ref, atol=5e-2, rtol=5e-2), max_err

    print("KERNEL_OK")
</pallas_src>

<mosaic_0001>
module attributes {stable_mosaic.version = 11 : i64} {
  func.func @_attention_classifier_kernel(%arg0: i32, %arg1: memref<16x32xbf16, #tpu.memory_space<vmem>>, %arg2: memref<32x96xbf16, #tpu.memory_space<vmem>>, %arg3: memref<1x96xf32, #tpu.memory_space<vmem>>, %arg4: memref<32x128xbf16, #tpu.memory_space<vmem>>, %arg5: memref<1x128xf32, #tpu.memory_space<vmem>>, %arg6: memref<16x128xf32, #tpu.memory_space<vmem>>) attributes {dimension_semantics = [#tpu.dimension_semantics<parallel>], iteration_bounds = array<i64: 2>, scalar_prefetch = 0 : i64, scratch_operands = 0 : i64, tpu.core_type = #tpu.core_type<tc>, window_params = [{transform_indices = @transform_0, window_bounds = array<i64: 16, 32>}, {pipeline_mode = #tpu.pipeline_mode<synchronous>, transform_indices = @transform_1, window_bounds = array<i64: 32, 96>}, {pipeline_mode = #tpu.pipeline_mode<synchronous>, transform_indices = @transform_2, window_bounds = array<i64: 1, 96>}, {pipeline_mode = #tpu.pipeline_mode<synchronous>, transform_indices = @transform_3, window_bounds = array<i64: 32, 128>}, {pipeline_mode = #tpu.pipeline_mode<synchronous>, transform_indices = @transform_4, window_bounds = array<i64: 1, 128>}, {transform_indices = @transform_5, window_bounds = array<i64: 16, 128>}]} {
    %c0 = arith.constant 0 : index
    %c0_0 = arith.constant 0 : index
    %0 = vector.load %arg1[%c0, %c0_0] : memref<16x32xbf16, #tpu.memory_space<vmem>>, vector<16x32xbf16>
    %c0_1 = arith.constant 0 : index
    %c0_2 = arith.constant 0 : index
    %1 = vector.load %arg2[%c0_1, %c0_2] : memref<32x96xbf16, #tpu.memory_space<vmem>>, vector<32x96xbf16>
    %cst = arith.constant dense<0.000000e+00> : vector<16x96xf32>
    %2 = tpu.matmul %0, %1, %cst {dimension_numbers = #tpu.dot_dimension_numbers<[1], [0], [0], [1], [0, 0, 1, 1], [], []>} : vector<16x32xbf16>, vector<32x96xbf16>, vector<16x96xf32> -> vector<16x96xf32>
    %c0_3 = arith.constant 0 : index
    %c0_4 = arith.constant 0 : index
    %3 = vector.load %arg3[%c0_3, %c0_4] : memref<1x96xf32, #tpu.memory_space<vmem>>, vector<1x96xf32>
    %4 = vector.broadcast %3 : vector<1x96xf32> to vector<16x96xf32>
    %5 = arith.addf %2, %4 : vector<16x96xf32>
    %6 = vector.extract_strided_slice %5 {offsets = [0, 0], sizes = [8, 32], strides = [1, 1]} : vector<16x96xf32> to vector<8x32xf32>
    %7 = arith.truncf %6 : vector<8x32xf32> to vector<8x32xbf16>
    %8 = vector.extract_strided_slice %5 {offsets = [0, 32], sizes = [8, 32], strides = [1, 1]} : vector<16x96xf32> to vector<8x32xf32>
    %9 = arith.truncf %8 : vector<8x32xf32> to vector<8x32xbf16>
    %10 = vector.extract_strided_slice %5 {offsets = [0, 64], sizes = [8, 32], strides = [1, 1]} : vector<16x96xf32> to vector<8x32xf32>
    %11 = arith.truncf %10 : vector<8x32xf32> to vector<8x32xbf16>
    %cst_5 = arith.constant dense<0.000000e+00> : vector<8x8xf32>
    %12 = tpu.matmul %7, %9, %cst_5 {dimension_numbers = #tpu.dot_dimension_numbers<[1], [1], [0], [0], [0, 0, 1, 0], [], []>} : vector<8x32xbf16>, vector<8x32xbf16>, vector<8x8xf32> -> vector<8x8xf32>
    %cst_6 = arith.constant dense<0xFF800000> : vector<8xf32>
    %13 = vector.multi_reduction <maximumf>, %12, %cst_6 [1] : vector<8x8xf32> to vector<8xf32>
    %14 = vector.shape_cast %13 : vector<8xf32> to vector<8x1xf32>
    %15 = vector.broadcast %14 : vector<8x1xf32> to vector<8x8xf32>
    %16 = arith.subf %12, %15 : vector<8x8xf32>
    %17 = math.exp %16 : vector<8x8xf32>
    %cst_7 = arith.constant dense<0.000000e+00> : vector<8xf32>
    %18 = vector.multi_reduction <add>, %17, %cst_7 [1] : vector<8x8xf32> to vector<8xf32>
    %19 = vector.shape_cast %18 : vector<8xf32> to vector<8x1xf32>
    %20 = tpu.reciprocal %19 {approx = true} : vector<8x1xf32> -> vector<8x1xf32>
    %21 = vector.broadcast %20 : vector<8x1xf32> to vector<8x8xf32>
    %22 = arith.mulf %17, %21 : vector<8x8xf32>
    %23 = arith.truncf %22 : vector<8x8xf32> to vector<8x8xbf16>
    %cst_8 = arith.constant dense<0.000000e+00> : vector<8x32xf32>
    %24 = tpu.matmul %23, %11, %cst_8 {dimension_numbers = #tpu.dot_dimension_numbers<[1], [0], [0], [1], [0, 0, 1, 1], [], []>} : vector<8x8xbf16>, vector<8x32xbf16>, vector<8x32xf32> -> vector<8x32xf32>
    %25 = arith.truncf %24 : vector<8x32xf32> to vector<8x32xbf16>
    %c0_9 = arith.constant 0 : index
    %c0_10 = arith.constant 0 : index
    %26 = vector.load %arg4[%c0_9, %c0_10] : memref<32x128xbf16, #tpu.memory_space<vmem>>, vector<32x128xbf16>
    %cst_11 = arith.constant dense<0.000000e+00> : vector<8x128xf32>
    %27 = tpu.matmul %25, %26, %cst_11 {dimension_numbers = #tpu.dot_dimension_numbers<[1], [0], [0], [1], [0, 0, 1, 1], [], []>} : vector<8x32xbf16>, vector<32x128xbf16>, vector<8x128xf32> -> vector<8x128xf32>
    %c0_12 = arith.constant 0 : index
    %c0_13 = arith.constant 0 : index
    %28 = vector.load %arg5[%c0_12, %c0_13] : memref<1x128xf32, #tpu.memory_space<vmem>>, vector<1x128xf32>
    %29 = vector.broadcast %28 : vector<1x128xf32> to vector<8x128xf32>
    %30 = arith.addf %27, %29 : vector<8x128xf32>
    %c0_14 = arith.constant 0 : index
    %c0_15 = arith.constant 0 : index
    %31 = vector.load %arg6[%c0_14, %c0_15] : memref<16x128xf32, #tpu.memory_space<vmem>>, vector<8x128xf32>
    tpu.vector_store %arg6[%c0_14, %c0_15], %30 {strides = array<i32>} : memref<16x128xf32, #tpu.memory_space<vmem>>, vector<8x128xf32>,
    %32 = vector.extract_strided_slice %5 {offsets = [8, 0], sizes = [8, 32], strides = [1, 1]} : vector<16x96xf32> to vector<8x32xf32>
    %33 = arith.truncf %32 : vector<8x32xf32> to vector<8x32xbf16>
    %34 = vector.extract_strided_slice %5 {offsets = [8, 32], sizes = [8, 32], strides = [1, 1]} : vector<16x96xf32> to vector<8x32xf32>
    %35 = arith.truncf %34 : vector<8x32xf32> to vector<8x32xbf16>
    %36 = vector.extract_strided_slice %5 {offsets = [8, 64], sizes = [8, 32], strides = [1, 1]} : vector<16x96xf32> to vector<8x32xf32>
    %37 = arith.truncf %36 : vector<8x32xf32> to vector<8x32xbf16>
    %cst_16 = arith.constant dense<0.000000e+00> : vector<8x8xf32>
    %38 = tpu.matmul %33, %35, %cst_16 {dimension_numbers = #tpu.dot_dimension_numbers<[1], [1], [0], [0], [0, 0, 1, 0], [], []>} : vector<8x32xbf16>, vector<8x32xbf16>, vector<8x8xf32> -> vector<8x8xf32>
    %cst_17 = arith.constant dense<0xFF800000> : vector<8xf32>
    %39 = vector.multi_reduction <maximumf>, %38, %cst_17 [1] : vector<8x8xf32> to vector<8xf32>
    %40 = vector.shape_cast %39 : vector<8xf32> to vector<8x1xf32>
    %41 = vector.broadcast %40 : vector<8x1xf32> to vector<8x8xf32>
    %42 = arith.subf %38, %41 : vector<8x8xf32>
    %43 = math.exp %42 : vector<8x8xf32>
    %cst_18 = arith.constant dense<0.000000e+00> : vector<8xf32>
    %44 = vector.multi_reduction <add>, %43, %cst_18 [1] : vector<8x8xf32> to vector<8xf32>
    %45 = vector.shape_cast %44 : vector<8xf32> to vector<8x1xf32>
    %46 = tpu.reciprocal %45 {approx = true} : vector<8x1xf32> -> vector<8x1xf32>
    %47 = vector.broadcast %46 : vector<8x1xf32> to vector<8x8xf32>
    %48 = arith.mulf %43, %47 : vector<8x8xf32>
    %49 = arith.truncf %48 : vector<8x8xf32> to vector<8x8xbf16>
    %cst_19 = arith.constant dense<0.000000e+00> : vector<8x32xf32>
    %50 = tpu.matmul %49, %37, %cst_19 {dimension_numbers = #tpu.dot_dimension_numbers<[1], [0], [0], [1], [0, 0, 1, 1], [], []>} : vector<8x8xbf16>, vector<8x32xbf16>, vector<8x32xf32> -> vector<8x32xf32>
    %51 = arith.truncf %50 : vector<8x32xf32> to vector<8x32xbf16>
    %c0_20 = arith.constant 0 : index
    %c0_21 = arith.constant 0 : index
    %52 = vector.load %arg4[%c0_20, %c0_21] : memref<32x128xbf16, #tpu.memory_space<vmem>>, vector<32x128xbf16>
    %cst_22 = arith.constant dense<0.000000e+00> : vector<8x128xf32>
    %53 = tpu.matmul %51, %52, %cst_22 {dimension_numbers = #tpu.dot_dimension_numbers<[1], [0], [0], [1], [0, 0, 1, 1], [], []>} : vector<8x32xbf16>, vector<32x128xbf16>, vector<8x128xf32> -> vector<8x128xf32>
    %c0_23 = arith.constant 0 : index
    %c0_24 = arith.constant 0 : index
    %54 = vector.load %arg5[%c0_23, %c0_24] : memref<1x128xf32, #tpu.memory_space<vmem>>, vector<1x128xf32>
    %55 = vector.broadcast %54 : vector<1x128xf32> to vector<8x128xf32>
    %56 = arith.addf %53, %55 : vector<8x128xf32>
    %c8 = arith.constant 8 : index
    %c0_25 = arith.constant 0 : index
    %57 = vector.load %arg6[%c8, %c0_25] : memref<16x128xf32, #tpu.memory_space<vmem>>, vector<8x128xf32>
    tpu.vector_store %arg6[%c8, %c0_25], %56 {strides = array<i32>} : memref<16x128xf32, #tpu.memory_space<vmem>>, vector<8x128xf32>,
    return
  }
  func.func @transform_0(%arg0: i32) -> (i32, i32) {
    %c0_i32 = arith.constant 0 : i32
    %c0_i32_0 = arith.constant 0 : i32
    return %arg0, %c0_i32 : i32, i32
  }
  func.func @transform_1(%arg0: i32) -> (i32, i32) {
    %c0_i32 = arith.constant 0 : i32
    %c0_i32_0 = arith.constant 0 : i32
    %c0_i32_1 = arith.constant 0 : i32
    return %c0_i32, %c0_i32_0 : i32, i32
  }
  func.func @transform_2(%arg0: i32) -> (i32, i32) {
    %c0_i32 = arith.constant 0 : i32
    %c0_i32_0 = arith.constant 0 : i32
    %c0_i32_1 = arith.constant 0 : i32
    return %c0_i32, %c0_i32_0 : i32, i32
  }
  func.func @transform_3(%arg0: i32) -> (i32, i32) {
    %c0_i32 = arith.constant 0 : i32
    %c0_i32_0 = arith.constant 0 : i32
    %c0_i32_1 = arith.constant 0 : i32
    return %c0_i32, %c0_i32_0 : i32, i32
  }
  func.func @transform_4(%arg0: i32) -> (i32, i32) {
    %c0_i32 = arith.constant 0 : i32
    %c0_i32_0 = arith.constant 0 : i32
    %c0_i32_1 = arith.constant 0 : i32
    return %c0_i32, %c0_i32_0 : i32, i32
  }
  func.func @transform_5(%arg0: i32) -> (i32, i32) {
    %c0_i32 = arith.constant 0 : i32
    %c0_i32_0 = arith.constant 0 : i32
    return %arg0, %c0_i32 : i32, i32
  }
}

</mosaic_0001>

<bundles_post_ra>
// kernel: tpu_custom_call.1
= control target key start
LH: loop header
LB: loop body
LE: loop exit
PB: predicated region body
PF: predicated region fallthrough
CT: control target
= control target key end

     0   :  { %10 = vsyncpa [#allocation3], 0  ;;  %s1497_s0 = inlined_call_operand.hbm [shape: bf16[32,32], index: 0, kind: input, shape index: {}]   ;;  %s1498_s1 = inlined_call_operand.hbm [shape: bf16[32,96], index: 1, kind: input, shape index: {}]   ;;  %s1499_s2 = inlined_call_operand.vmem [shape: f32[1,96], index: 2, kind: input, shape index: {}]   ;;  %s1500_s3 = inlined_call_operand.hbm [shape: bf16[32,128], index: 3, kind: input, shape index: {}]   ;;  %s1501_s4 = inlined_call_operand.vmem [shape: f32[1,128], index: 4, kind: input, shape index: {}]   ;;  %s1502_s5 = inlined_call_operand.hbm [shape: f32[32,128], index: 5, kind: output, shape index: {}]  }
   0x1   :  { %12 = vsyncpa [#allocation3 + $0x1], 0 }
   0x2   :  { %13 = vsyncpa [#allocation6], 0 }
   0x3   :  { %14 = vsyncpa [#allocation4], 0 }
   0x4   :  { %16 = vsyncpa [#allocation4 + $0x1], 0  ;;  %s1206_s18 = smov 0   ;;  %s1208_s19 = smov 0  }
   0x5   :  { %s1210_s20 = smov 0   ;;  %s1212_s21 = smov 0  }
   0x6 LB: > { %s1227_s22 = sadd.s32 4294967295, %s1162_s21   ;;  %s814_s23 = sadd.s32 4294967294, %s1162_s21   ;;  %s1162_s21 = sphi %s1212_s21, %s1522_s21   ;;  %s1158_s20 = sphi %s1210_s20, %s1521_s20   ;;  %s1154_s19 = sphi %s1208_s19, %s1520_s19   ;;  %s1150_s18 = sphi %s1206_s18, %s1519_s18  }
   0x7   : > { %p42_p0 = scmp.ne.s32.totalorder %s1154_s19, %s1150_s18  ;;  %p1503_p1 = scmp.eq.s32.totalorder %s1227_s22, 0 }
   0x8   : > { %p156_p3 = scmp.eq.s32.totalorder %s814_s23, 1  ;;  %p815_p5 = scmp.ge.s32.totalorder %s1162_s21, 1 }
   0x9   : > { %p1236_p4 = por %p1503_p1, %p42_p0  ;;  %p163_p7 = scmp.lt.s32.totalorder %s1162_s21, 3 }
   0xa   : > { %p1241_p6 = por %p156_p3, %p42_p0  ;;  %s1164_s27 = smov [#allocation5]  }
   0xb   : > { %s1506_s24 = scalar_select %p1236_p4, 1, 0 }
   0xc   : > { %s1507_s25 = scalar_select %p1241_p6, 1, 0 }
   0xd   : > { %p1246_p8 = pnand %p815_p5, %p163_p7  ;;  %s175_s28 = sshll.u32 %s1164_s27, 4  ;;  %s1250_s28 = int_to_ptr.vmem [resolvable:$true] %s175_s28 }
   0xe   : > { %s1165_s30 = smov [#allocation7]   ;;  %s1006_s9 = scalar_lea.hbm %s1498_s1, 256 }
   0xf   : > { %p928_p9 = pneg %p1246_p8  ;;  %s191_s6 = sshll.u32 %s1165_s30, 4  ;;  %s1261_s6 = int_to_ptr.vmem [resolvable:$true] %s191_s6 }
  0x10   : > { %p1007_p12 = scmp.ne.s32.totalorder %s1498_s1, %s1006_s9  ;;  %p1013_p5 = scmp.lt.u32.totalorder %s1006_s9, %s1498_s1 }
  0x11   : > { %p1257_p11 = pnand %p928_p9, %p1503_p1 }
  0x13   : > { %p1008_p13 = pneg %p1257_p11 }
  0x15   : > { %p1009_p0 = pnand %p1008_p13, %p1007_p12 }
  0x17   : > { %p1010_p3 = pneg %p1009_p0 }
  0x19   : > { %p1015_p7 = pnand %p1013_p5, %p1010_p3 }
  0x1b   : > { %1018 = shalt.err (!%p1015_p7)
}
  0x1c   : > { %s1019_s14 = scalar_lea.vmem %s1250_s28, 256  ;;  %p1027_p2 = scmp.lt.s32.totalorder %s1250_s28, %s1250_s28 }
  0x1d   : > { %p1020_p9 = scmp.ne.s32.totalorder %s1250_s28, %s1019_s14  ;;  %p1028_p12 = scmp.lt.s32.totalorder %s1019_s14, %s1019_s14 }
  0x1f   : > { %p1022_p10 = pnand %p1020_p9, %p1008_p13  ;;  %p1029_p0 = por %p1028_p12, %p1027_p2 }
  0x21   : > { %p1023_p1 = pneg %p1022_p10 }
  0x23   : > { %p1030_p6 = pnand %p1029_p0, %p1023_p1 }
  0x25   : > { %1033 = shalt.err (!%p1030_p6)
}
  0x26   : > { %s1166_s15 = smov 64   ;;  %s1167_s16 = smov 4  }
  0x27   : > { %931 = dma.hbm_to_vmem [thread:$0]  (!%p1257_p11), %s1498_s1, 256, %s1250_s28, [#allocation6], %s1166_s15, %s1166_s15, %s1167_s16  }
  0x28   : > { %s1034_s7 = scalar_lea.hbm %s1500_s3, 256 }
  0x29   : > { %p1035_p1 = scmp.ne.s32.totalorder %s1500_s3, %s1034_s7  ;;  %p1041_p10 = scmp.lt.u32.totalorder %s1034_s7, %s1500_s3 }
  0x2b   : > { %p1037_p2 = pnand %p1035_p1, %p1008_p13 }
  0x2d   : > { %p1038_p6 = pneg %p1037_p2 }
  0x2f   : > { %p1043_p3 = pnand %p1041_p10, %p1038_p6 }
  0x31   : > { %1046 = shalt.err (!%p1043_p3)
}
  0x32   : > { %s1047_s28 = scalar_lea.vmem %s1261_s6, 256  ;;  %p1055_p12 = scmp.lt.s32.totalorder %s1261_s6, %s1261_s6 }
  0x33   : > { %p1048_p5 = scmp.ne.s32.totalorder %s1261_s6, %s1047_s28  ;;  %p1056_p0 = scmp.lt.s32.totalorder %s1047_s28, %s1047_s28 }
  0x35   : > { %p1050_p7 = pnand %p1048_p5, %p1008_p13  ;;  %p1057_p1 = por %p1056_p0, %p1055_p12 }
  0x37   : > { %p1051_p9 = pneg %p1050_p7 }
  0x39   : > { %p1058_p2 = pnand %p1057_p1, %p1051_p9 }
  0x3b   : > { %1061 = shalt.err (!%p1058_p2)
}
  0x3c   : > { %934 = dma.hbm_to_vmem [thread:$0]  (!%p1257_p11), %s1500_s3, 256, %s1261_s6, [#allocation6], %s1166_s15, %s1166_s15, %s1167_s16  }
  0x3d   : > { %s1322_s29 = sadd.s32 1, %s1162_s21   ;;  %s29_s14 = sadd.s32 1, %s1158_s20 }
  0x3e   : > { %s26_s17 = ssub.s32 %s1162_s21, %s1322_s29  ;;  %p36_p13 = scmp.ne.s32.totalorder %s1158_s20, %s1154_s19 }
  0x3f   : > { %p27_p6 = scmp.eq.s32.totalorder %s26_s17, 0  ;;  %p37_p10 = scmp.eq.s32.totalorder %s1162_s21, 0 }
  0x40   : > { %p1510_p3 = scmp.eq.s32.totalorder %s1227_s22, 1  ;;  %p945_p7 = scmp.lt.s32.totalorder %s1162_s21, 2 }
  0x41   : > { %s1338_s27 = scalar_select %p27_p6, %s1158_s20, %s29_s14  }
  0x42   : > { %p1332_p5 = por %p1510_p3, %p36_p13  ;;  %p38_p9 = por %p37_p10, %p36_p13 }
  0x43   : > { %s208_s30 = sand.u32 1, %s1158_s20   ;;  %s849_s6 = sshll.u32 %s1162_s21, 7 }
  0x44   : > { %s1511_s23 = scalar_select %p1332_p5, 1, 0 }
  0x45   : > { %s819_s7 = sshll.u32 %s208_s30, 3  ;;  %s1345_s10 = scalar_lea.hbm %s1497_s0, %s849_s6 }
  0x46   : > { %s212_s11 = scalar_lea.vmem [#allocation2], %s819_s7  ;;  %p1349_p11 = pnand %p945_p7, %p38_p9 }
  0x47   : > { %s219_s28 = sshll.u32 %s212_s11, 4  ;;  %s1353_s13 = scalar_lea.sflag [#allocation3], %s208_s30  ;;  %s1347_s28 = int_to_ptr.vmem [resolvable:$true] %s219_s28 }
  0x48   : > { %s1062_s14 = scalar_lea.hbm %s1345_s10, 128  ;;  %p1064_p0 = pneg %p1349_p11 }
  0x49   : > { %p1063_p12 = scmp.ne.s32.totalorder %s1345_s10, %s1062_s14  ;;  %s1067_s6 = scalar_lea.hbm %s1497_s0, 256 }
  0x4a   : > { %p1068_p13 = scmp.lt.u32.totalorder %s1345_s10, %s1497_s0  ;;  %p1069_p6 = scmp.lt.u32.totalorder %s1067_s6, %s1062_s14 }
  0x4b   : > { %p1065_p1 = pnand %p1064_p0, %p1063_p12  ;;  %p1071_p3 = scmp.lt.u32.totalorder %s1062_s14, %s1345_s10 }
  0x4c   : > { %p1070_p10 = por %p1069_p6, %p1068_p13 }
  0x4d   : > { %p1066_p2 = pneg %p1065_p1 }
  0x4e   : > { %p1072_p7 = por %p1071_p3, %p1070_p10 }
  0x50   : > { %p1073_p9 = pnand %p1072_p7, %p1066_p2 }
  0x52   : > { %1076 = shalt.err (!%p1073_p9)
}
  0x53   : > { %s1077_s30 = scalar_lea.vmem %s1347_s28, 128  ;;  %s1168_s11 = smov [#allocation2]  }
  0x54   : > { %p1078_p12 = scmp.ne.s32.totalorder %s1347_s28, %s1077_s30  ;;  %s1082_s17 = sshll.u32 %s1168_s11, 4  ;;  %s1083_s17 = int_to_ptr.vmem [resolvable:$false] %s1082_s17 }
  0x55   : > { %s1084_s7 = scalar_lea.vmem %s1083_s17, 256  ;;  %p1085_p4 = scmp.lt.s32.totalorder %s1347_s28, %s1083_s17 }
  0x56   : > { %p1080_p1 = pnand %p1078_p12, %p1064_p0  ;;  %p1086_p13 = scmp.lt.s32.totalorder %s1084_s7, %s1077_s30 }
  0x58   : > { %p1081_p5 = pneg %p1080_p1  ;;  %p1087_p6 = por %p1086_p13, %p1085_p4 }
  0x5a   : > { %p1088_p10 = pnand %p1087_p6, %p1081_p5 }
  0x5c   : > { %1091 = shalt.err (!%p1088_p10)
}
  0x5d   : > { %938 = dma.hbm_to_vmem [thread:$0]  (!%p1349_p11), %s1345_s10, 128, %s1347_s28, %s1353_s13, %s1166_s15, %s1166_s15, %s1167_s16  }
  0x5e   : > { %231 = sbr.rel (%p1246_p8) target bundleno = 1961 (0x7a9), region = 40  ;;  %s1387_s14 = sand.u32 (!%p1246_p8), 1, %s1154_s19  }
  0x5f   : > { %s823_s6 = sshll.u32 (!%p1246_p8), %s1387_s14, 3  ;;  %s234_s8 = scalar_lea.sflag (!%p1246_p8), [#allocation3], %s1387_s14 }
  0x60   : > { %s237_s9 = scalar_lea.vmem (!%p1246_p8), [#allocation2], %s823_s6  ;;  %p1513_p4 = scmp.ne.s32.totalorder (!%p1246_p8), %s1506_s24, 0 }
  0x65   : > { %1137 = dma.done.wait (%p1513_p4), %s234_s8, 128  }
  0x66   : > { %1139 = vsyncadd (%p1513_p4), %s234_s8, 4294967168  ;;  %p1514_p5 = scmp.eq.s32.totalorder %s1227_s22, 0 }
  0x68   : > { %1141 = dma.done.wait (%p1514_p5), [#allocation6], 512   ;;  %p1515_p11 = pmov %p1514_p5 }
  0x69   : > { %v1169_v0 = vmov 0.0   ;;  %vm1170_vm0 = vmmov 0   ;;  %v991_v1 = vld [vmem:[#allocation5] sm:$0xff]   ;;  %v992_v2 = vld [vmem:[#allocation5 + $0x8] sm:$0xff]   ;;  %v993_v3 = vld [vmem:[%s237_s9] sm:$0xff]   ;;  %vm305_vm1 = vcmask 261120  }
  0x6a   : > { %1143 = vsyncadd (%p1515_p11), [#allocation6], 4294966784  ;;  %868 = vmatprep.subr.bf16.mxu0 %v1169_v0  ;;  %872 = vmatprep.mubr.msk.bf16.mxu0 %vm1170_vm0, %v1169_v0  ;;  %v827_v4 = vld [vmem:[%s1499_s2] ss:$0 sm:$0xff]  ;;  %s1171_s15 = smov 64   ;;  %s1172_s16 = smov 96  }
  0x6b   : > { %876 = vmatprep.subr.bf16.mxu1 %v1169_v0  ;;  %878 = vmatprep.mubr.msk.bf16.mxu1 %vm1170_vm0, %v1169_v0  ;;  %vm418_vm2 = vcmask 1043456   ;;  %vm400_vm3 = vcmask 64512   ;;  %v994_v27 = vld [vmem:[#allocation7] sm:$0xff]   ;;  %v995_v34 = vld [vmem:[#allocation7 + $0x8] sm:$0xff]   ;;  %s826_s10 = sshll.u32 %s1387_s14, 4  ;;  %s850_s11 = sshll.u32 %s1227_s22, 8 }
  0x6c   : > { %869 = vmatpush3.bf16.msra.mxu0 %v991_v1  ;;  %v996_v50 = vld [vmem:[#allocation7] sm:$0xff]   ;;  %v997_v51 = vld [vmem:[#allocation7 + $0x8] sm:$0xff]   ;;  %s271_s13 = scalar_lea.vmem [#allocation8], %s826_s10  ;;  %s1453_s6 = scalar_lea.hbm %s1502_s5, %s850_s11 }
  0x6d   : > { %870 = vmatprep.subr.bf16.mxu0 %v1169_v0  ;;  %v834_v52 = vld [vmem:[%s1501_s4] ss:$0 sm:$0xff]  ;;  %s722_s30 = sshll.u32 %s271_s13, 4  ;;  %s709_s8 = scalar_lea.sflag [#allocation4], %s1387_s14  ;;  %s1448_s30 = int_to_ptr.vmem [resolvable:$true] %s722_s30 }
  0x6e   : > { %s1092_s9 = scalar_lea.vmem %s1448_s30, 256  ;;  %p1516_p0 = scmp.ne.s32.totalorder %s1511_s23, 0 }
  0x6f   : > { %p1093_p8 = scmp.ne.s32.totalorder %s1448_s30, %s1092_s9  ;;  %s1173_s22 = smov [#allocation8]  }
  0x70   : > { %871 = vmatpush3.bf16.msra.mxu0 %v992_v2  ;;  %s1096_s24 = sshll.u32 %s1173_s22, 4  ;;  %s1097_s24 = int_to_ptr.vmem [resolvable:$false] %s1096_s24 }
  0x71   : > { %882 = vmatprep.subr.bf16.mxu0 %v1169_v0  ;;  %p1094_p2 = pnand %p1093_p8, %p1516_p0  ;;  %s1098_s26 = scalar_lea.vmem %s1097_s24, 512 }
  0x72   : > { %p1099_p7 = scmp.lt.s32.totalorder %s1448_s30, %s1097_s24  ;;  %p1100_p9 = scmp.lt.s32.totalorder %s1098_s26, %s1092_s9 }
  0x73   : > { %873 = vmatmul.mubr.msk.bf16.vlgmr.msra.gmra.mrb[0].mxu0 %vm305_vm1, %v993_v3  ;;  %p1095_p3 = pneg %p1094_p2 }
  0x74   : > { %884 = vmatprep.mubr.msk.bf16.mxu0 %vm1170_vm0, %v1169_v0  ;;  %p1101_p12 = por %p1100_p9, %p1099_p7 }
  0x76   : > { %p1102_p1 = pnand %p1101_p12, %p1095_p3 }
 0x146   : > { %v343_v5 = vpop.f32.mrb[0].mxu0 }
 0x147   : > { %v344_v6 = vadd.f32 %v827_v4, %v343_v5  ;;  %v874_v7 = vpop.f32.mrb[1].mxu0 }
 0x148   : > { %v346_v8 = vpop.f32.mrb[2].mxu0 }
 0x149   : > { %v350_v9 = vpack.c.bf16 %v344_v6, %v344_v6  ;;  %v347_v10 = vadd.f32 %v827_v4, %v346_v8  ;;  %v875_v11 = vpop.f32.mrb[3].mxu0 }
 0x14b   : > { %413 = vrot.lane.b32.xlu1 %v350_v9, %s1171_s15  ;;  %352 = vrot.lane.b32.xlu0 %v350_v9, %s1172_s16  ;;  %v530_v26 = vpack.c.bf16 %v347_v10, %v347_v10 }
 0x1bd   : > { %v414_v12 = vpop.permute.xlu1 %413  ;;  %v353_v13 = vpop.permute.xlu0 %352 }
 0x1be   : > { %v420_v14 = vsel %vm418_vm2, %v414_v12, 0  ;;  %v358_v15 = vsel %vm305_vm1, %v353_v13, 0 }
 0x1bf   : > { %877 = vmatpush3.bf16.xpose.msra.mxu1 %v358_v15  ;;  %883 = vmatpush3.bf16.msra.mxu0 %v420_v14 }
 0x1c0   : > { %896 = vmatprep.subr.bf16.mxu0 %v1169_v0  ;;  %888 = vmatprep.subr.bf16.mxu1 %v1169_v0 }
 0x1c6   : > { %879 = vmatmul.mubr.msk.bf16.vlgmr.msra.gmra.mrb[0].mxu1 %vm305_vm1, %v350_v9 }
 0x1c7   : > { %892 = vmatprep.mubr.msk.bf16.mxu1 %vm1170_vm0, %v1169_v0  ;;  %889 = vmatpush3.bf16.msra.mxu1 %v994_v27 }
 0x1c8   : > { %890 = vmatprep.subr.bf16.mxu1 %v1169_v0 }
 0x1cb   : > { %891 = vmatpush3.bf16.msra.mxu1 %v995_v34 }
 0x1cc   : > { %902 = vmatprep.subr.bf16.mxu1 %v1169_v0 }
 0x299   : > { %v394_v16 = vpop.f32.mrb[0].mxu1 }
 0x29a   : > { %v880_v17 = vpop.f32.mrb[1].mxu1  ;;  %v401_v18 = vsel %vm400_vm3, %v394_v16, -inf }
 0x29b   : > { %402 = vmax.xlane.f32.xlu0 %v401_v18  ;;  %v397_v19 = vpop.f32.mrb[2].mxu1 }
 0x29c   : > { %v881_v20 = vpop.f32.mrb[3].mxu1 }
 0x328   : > { %v403_v21 = vpop.xlane.xlu0 %402 }
 0x329   : > { %v404_v22 = vsub.f32 %v394_v16, %v403_v21 }
 0x32b   : > { %v405_v23 = vmul.f32 1.442695, %v404_v22 }
 0x32d   : > { %998 = vpow2.f32 %v405_v23 }
 0x337   : > { %v999_v24 = vpop.eup %998 }
 0x338   : > { %v407_v25 = vsel %vm400_vm3, %v999_v24, 0.0 }
 0x339   : > { %408 = vadd.xlane.f32.xlu1 %v407_v25 }
 0x34a   : > { %532 = vrot.lane.b32.xlu1 %v530_v26, %s1172_s16 }
 0x3c6   : > { %v409_v28 = vpop.xlane.xlu1 %408 }
 0x3c7   : > { %1000 = vrcp.f32 %v409_v28 }
 0x3ca   : > { %v533_v31 = vpop.permute.xlu1 %532 }
 0x3cb   : > { %v538_v33 = vsel %vm305_vm1, %v533_v31, 0 }
 0x3d1   : > { %v1001_v29 = vpop.eup %1000 }
 0x3d2   : > { %v411_v30 = vmul.f32 %v1001_v29, %v999_v24 }
 0x3d4   : > { %v412_v32 = vpack.c.bf16 %v411_v30, %v411_v30 }
 0x3d6   : > { %885 = vmatmul.mubr.msk.bf16.vlgmr.msra.gmra.mrb[4].mxu0 %vm400_vm3, %v412_v32 }
 0x3d7   : > { %897 = vmatpush3.bf16.xpose.msra.mxu0 %v538_v33  ;;  %898 = vmatprep.mubr.msk.bf16.mxu0 %vm1170_vm0, %v1169_v0 }
 0x3d8   : > { %908 = vmatprep.subr.bf16.mxu0 %v1169_v0 }
 0x3de   : > { %899 = vmatmul.mubr.msk.bf16.vlgmr.msra.gmra.mrb[8].mxu0 %vm305_vm1, %v530_v26 }
 0x3df   : > { %912 = vmatprep.mubr.msk.bf16.mxu0 %vm1170_vm0, %v1169_v0  ;;  %909 = vmatpush3.bf16.msra.mxu0 %v996_v50 }
 0x3e0   : > { %910 = vmatprep.subr.bf16.mxu0 %v1169_v0 }
 0x3e3   : > { %911 = vmatpush3.bf16.msra.mxu0 %v997_v51 }
 0x4a9   : > { %v456_v35 = vpop.f32.mrb[4].mxu0 }
 0x4aa   : > { %v462_v36 = vpack.c.bf16 %v456_v35, %v456_v35  ;;  %v886_v37 = vpop.f32.mrb[5].mxu0 }
 0x4ab   : > { %v459_v38 = vpop.f32.mrb[6].mxu0 }
 0x4ac   : > { %v887_v39 = vpop.f32.mrb[7].mxu0  ;;  %893 = vmatmul.mubr.msk.bf16.vlgmr.msra.gmra.mrb[4].mxu1 %vm305_vm1, %v462_v36 }
 0x4ad   : > { %904 = vmatprep.mubr.msk.bf16.mxu1 %vm1170_vm0, %v1169_v0 }
 0x4b1   : > { %v574_v40 = vpop.f32.mrb[8].mxu0 }
 0x4b2   : > { %v900_v41 = vpop.f32.mrb[9].mxu0  ;;  %v580_v42 = vsel %vm400_vm3, %v574_v40, -inf }
 0x4b3   : > { %581 = vmax.xlane.f32.xlu1 %v580_v42  ;;  %v577_v43 = vpop.f32.mrb[10].mxu0 }
 0x4b4   : > { %v901_v44 = vpop.f32.mrb[11].mxu0 }
 0x540   : > { %v582_v45 = vpop.xlane.xlu1 %581 }
 0x541   : > { %v583_v46 = vsub.f32 %v574_v40, %v582_v45 }
 0x543   : > { %v584_v47 = vmul.f32 1.442695, %v583_v46 }
 0x545   : > { %1002 = vpow2.f32 %v584_v47 }
 0x54f   : > { %v1003_v48 = vpop.eup %1002 }
 0x550   : > { %v586_v49 = vsel %vm400_vm3, %v1003_v48, 0.0 }
 0x551   : > { %587 = vadd.xlane.f32.xlu0 %v586_v49 }
 0x567   : > { %592 = vrot.lane.b32.xlu0 %v530_v26, %s1171_s15 }
 0x57f   : > { %v523_v53 = vpop.f32.mrb[4].mxu1 }
 0x580   : > { %v524_v54 = vadd.f32 %v834_v52, %v523_v53  ;;  %v894_v55 = vpop.f32.mrb[5].mxu1 }
 0x581   : > { %v526_v56 = vpop.f32.mrb[6].mxu1 }
 0x582   : > { %529 = vst [vmem:[%s271_s13] sm:$0xff] %v524_v54  ;;  %v895_v57 = vpop.f32.mrb[7].mxu1 }
 0x5de   : > { %v588_v58 = vpop.xlane.xlu0 %587 }
 0x5df   : > { %1004 = vrcp.f32 %v588_v58 }
 0x5e2   : > { %v593_v59 = vpop.permute.xlu0 %592 }
 0x5e3   : > { %v598_v60 = vsel %vm418_vm2, %v593_v59, 0 }
 0x5e4   : > { %903 = vmatpush3.bf16.msra.mxu1 %v598_v60 }
 0x5e9   : > { %v1005_v61 = vpop.eup %1004 }
 0x5ea   : > { %v590_v62 = vmul.f32 %v1005_v61, %v1003_v48 }
 0x5ec   : > { %v591_v63 = vpack.c.bf16 %v590_v62, %v590_v62 }
 0x5ee   : > { %905 = vmatmul.mubr.msk.bf16.vlgmr.msra.gmra.mrb[8].mxu1 %vm400_vm3, %v591_v63 }
 0x6c1   : > { %v634_v0 = vpop.f32.mrb[8].mxu1 }
 0x6c2   : > { %v640_v1 = vpack.c.bf16 %v634_v0, %v634_v0  ;;  %v906_v2 = vpop.f32.mrb[9].mxu1 }
 0x6c3   : > { %v637_v3 = vpop.f32.mrb[10].mxu1 }
 0x6c4   : > { %v907_v4 = vpop.f32.mrb[11].mxu1  ;;  %913 = vmatmul.mubr.msk.bf16.vlgmr.msra.gmra.mrb[12].mxu0 %vm305_vm1, %v640_v1 }
 0x797   : > { %v701_v5 = vpop.f32.mrb[12].mxu0 }
 0x798   : > { %v702_v6 = vadd.f32 %v834_v52, %v701_v5  ;;  %v914_v7 = vpop.f32.mrb[13].mxu0 }
 0x799   : > { %v704_v8 = vpop.f32.mrb[14].mxu0 }
 0x79a   : > { %707 = vst [vmem:[%s271_s13 + $0x8] sm:$0xff] %v702_v6  ;;  %v915_v9 = vpop.f32.mrb[15].mxu0 }
 0x79b   : > { %1105 = shalt.err (!%p1102_p1)
}
 0x79c   : > { %s1106_s15 = scalar_lea.hbm %s1453_s6, 256  ;;  %s1110_s28 = scalar_lea.hbm %s1502_s5, 512 }
 0x79d   : > { %p1107_p13 = scmp.ne.s32.totalorder %s1453_s6, %s1106_s15  ;;  %p1111_p4 = scmp.lt.u32.totalorder %s1453_s6, %s1502_s5 }
 0x79e   : > { %p1112_p5 = scmp.lt.u32.totalorder %s1110_s28, %s1106_s15  ;;  %p1114_p8 = scmp.lt.u32.totalorder %s1106_s15, %s1453_s6 }
 0x79f   : > { %p1108_p6 = pnand %p1107_p13, %p1516_p0 }
 0x7a0   : > { %p1113_p11 = por %p1112_p5, %p1111_p4 }
 0x7a1   : > { %p1109_p10 = pneg %p1108_p6 }
 0x7a2   : > { %p1115_p2 = por %p1114_p8, %p1113_p11 }
 0x7a4   : > { %p1116_p3 = pnand %p1115_p2, %p1109_p10 }
 0x7a6   : > { %1119 = shalt.err (!%p1116_p3)
}
 0x7a7   : > { %s1174_s11 = smov 128   ;;  %s1175_s17 = smov 8  }
 0x7a8   : > { %926 = dma.vmem_to_hbm [thread:$0]  (%p1516_p0), %s1448_s30, 256, %s1453_s6, %s709_s8, %s1174_s11, %s1174_s11, %s1175_s17  }
 0x7a9 PF: > { %s737_s7 = sand.u32 1, %s1150_s18   ;;  %p1517_p7 = scmp.ne.s32.totalorder %s1507_s25, 0 }
 0x7aa   : > { %p1518_p9 = scmp.ge.s32.totalorder %s1162_s21, 2  ;;  %s738_s9 = scalar_lea.sflag [#allocation4], %s737_s7 }
 0x7ac   : > { %p940_p12 = pnand %p1518_p9, %p1517_p7 }
 0x7ae   : > { %1145 = dma.done.wait (!%p940_p12), %s738_s9, 256  }
 0x7af   : > { %1147 = vsyncadd (!%p940_p12), %s738_s9, 4294967040  ;;  %p19_p1 = scmp.ge.s32.totalorder %s1322_s29, 4   ;;  %s1519_s18 = smov %s1154_s19 }
 0x7b0   : > { %s1520_s19 = smov %s1158_s20  ;;  %s1521_s20 = smov %s1338_s27 }
 0x7b1   : > { %s1522_s21 = smov %s1322_s29  ;;  %21 = sbr.rel (!%p19_p1) target bundleno = 6 (0x6), region = 93 }
 0x7b8   :  { %743 = vsyncpa [#allocation3], 1 }
 0x7b9   :  { %745 = vsyncpa [#allocation3 + $0x1], 1 }
 0x7ba   :  { %746 = vsyncpa [#allocation6], 1 }
 0x7bb   :  { %747 = vsyncpa [#allocation4], 1 }
 0x7bc   :  { %749 = vsyncpa [#allocation4 + $0x1], 1 }

</bundles_post_ra>
